<compile_context>
chip_gen: v6e
topology: v6e:2x2x1
jax: 0.10.0
libtpu: 0.0.40
codegen_flags: <defaults>
</compile_context>

<pallas_src>
import functools
import math

import jax
import jax.numpy as jnp
from jax import lax
from jax.experimental import pallas as pl
from jax.experimental.pallas import tpu as pltpu


# ----------------------------------------------------------------------------
# Channel-major attention + folded output projection + residual (one batch).
#   x, xn : (C, S)   wqkv : (3C, C)   bqkv : (3C, 1)   w2 : (C, C)   b2 : (C, 1)
# ----------------------------------------------------------------------------
def _attention_tail(x, xn, wqkv, bqkv, w2, b2, C):
    # Fused QKV projection; the 1/sqrt(C) scale is already folded into the
    # q rows of wqkv / bqkv.
    qkv = jnp.dot(wqkv, xn, preferred_element_type=jnp.float32) + bqkv   # (3C, S)
    q = qkv[:C]                 # sublane slices -> no lane relayout
    k = qkv[C:2 * C]
    v = qkv[2 * C:]

    # scores[s1, s2] = sum_c q[c, s1] k[c, s2]   (== row-major q @ k^T)
    s = lax.dot_general(q, k, (((0,), (0,)), ((), ())),
                        preferred_element_type=jnp.float32)              # (S, S)
    p = jnp.exp(s - jnp.max(s, axis=-1, keepdims=True))
    p = p * pl.reciprocal(jnp.sum(p, axis=-1, keepdims=True), approx=True)

    # ctx_t[c, s1] = sum_s2 v[c, s2] p[s1, s2]   (== row-major (p @ v)^T)
    ctx = lax.dot_general(v, p, (((1,), (1,)), ((), ())),
                          preferred_element_type=jnp.float32)            # (C, S)

    # Folded out_proj ∘ linear:  y_t = (Wl Wo) @ ctx_t + (Wl bo + bl)
    y = jnp.dot(w2, ctx, preferred_element_type=jnp.float32) + b2        # (C, S)
    return x + y


# ----------------------------------------------------------------------------
# Kernel for channels_per_group == 1 (C == num_groups): pure VPU/XLU stats.
# ----------------------------------------------------------------------------
def _kernel_cpg1(x_ref, vec_ref, w_ref, o_ref, *, B, C, inv_n, eps):
    vecs = vec_ref[...]                       # (6C, 1)
    gnw, gnb = vecs[:C], vecs[C:2 * C]
    bqkv = vecs[2 * C:5 * C]
    b2 = vecs[5 * C:]
    w = w_ref[...]                            # (4C, C)
    wqkv, w2 = w[:3 * C], w[3 * C:]
    for b in range(B):                        # static unroll (B is tiny)
        x = x_ref[b]                          # (C, S)
        mean = jnp.sum(x, axis=-1, keepdims=True) * inv_n
        xc = x - mean
        var = jnp.sum(xc * xc, axis=-1, keepdims=True) * inv_n   # two-pass var
        xn = xc * lax.rsqrt(var + eps) * gnw + gnb
        o_ref[b] = _attention_tail(x, xn, wqkv, bqkv, w2, b2, C)


# ----------------------------------------------------------------------------
# General kernel (channels_per_group > 1): group stats via 0/1 matrices.
# ----------------------------------------------------------------------------
def _kernel_grouped(x_ref, vec_ref, w_ref, m_ref, mt_ref, o_ref, *, B, C, inv_n, eps):
    vecs = vec_ref[...]
    gnw, gnb = vecs[:C], vecs[C:2 * C]
    bqkv = vecs[2 * C:5 * C]
    b2 = vecs[5 * C:]
    w = w_ref[...]
    wqkv, w2 = w[:3 * C], w[3 * C:]
    m = m_ref[...]                            # (C, G) one-hot group membership
    mt = mt_ref[...]                          # (G, C)
    for b in range(B):
        x = x_ref[b]                          # (C, S)
        s_c = jnp.sum(x, axis=-1, keepdims=True)                          # (C, 1)
        mean_c = jnp.dot(m, jnp.dot(mt, s_c, preferred_element_type=jnp.float32),
                         preferred_element_type=jnp.float32) * inv_n      # (C, 1)
        xc = x - mean_c
        sq = jnp.sum(xc * xc, axis=-1, keepdims=True)
        var_g = jnp.dot(mt, sq, preferred_element_type=jnp.float32) * inv_n
        inv_c = jnp.dot(m, lax.rsqrt(var_g + eps),
                        preferred_element_type=jnp.float32)               # (C, 1)
        xn = xc * inv_c * gnw + gnb
        o_ref[b] = _attention_tail(x, xn, wqkv, bqkv, w2, b2, C)


# ----------------------------------------------------------------------------
# One-time weight preparation (run OUTSIDE the hot path).
# ----------------------------------------------------------------------------
def prepare_params(params, *, num_groups=32):
    f32 = jnp.float32
    C = params["gn_w"].shape[0]
    G = num_groups
    assert C % G == 0, "channels must be divisible by num_groups"
    cpg = C // G

    scale = 1.0 / math.sqrt(C)                  # head_dim == C (single head)
    in_w = jnp.asarray(params["in_proj_w"], f32)   # (3C, C), rows = out features
    in_b = jnp.asarray(params["in_proj_b"], f32)
    wqkv = jnp.concatenate([in_w[:C] * scale, in_w[C:]], axis=0)          # (3C, C)
    bqkv = jnp.concatenate([in_b[:C] * scale, in_b[C:]], axis=0)          # (3C,)

    lin_w = jnp.asarray(params["lin_w"], f32)
    # channel-major fold of out_proj ∘ linear:  W2 = Wl @ Wo, b2 = Wl @ bo + bl
    w2 = lin_w @ jnp.asarray(params["out_proj_w"], f32)                   # (C, C)
    b2 = lin_w @ jnp.asarray(params["out_proj_b"], f32) \
         + jnp.asarray(params["lin_b"], f32)                              # (C,)

    vecs = jnp.concatenate([jnp.asarray(params["gn_w"], f32),
                            jnp.asarray(params["gn_b"], f32),
                            bqkv, b2]).reshape(6 * C, 1)                  # (6C, 1)
    wslab = jnp.concatenate([wqkv, w2], axis=0)                           # (4C, C)

    packed = {"vecs": vecs, "w": wslab}
    if cpg > 1:
        m = (jnp.arange(C)[:, None] // cpg == jnp.arange(G)[None, :]).astype(f32)
        packed["m"] = m          # (C, G)
        packed["mt"] = m.T       # (G, C)
    return packed


# ----------------------------------------------------------------------------
# Forward: NCHW in, NCHW out (only free reshapes on the wrapper side).
# ----------------------------------------------------------------------------
def transformer_block_apply(x_nchw, packed, *, num_groups=32, eps=1e-5):
    B, C, H, W = x_nchw.shape
    S = H * W
    G = num_groups
    assert C % G == 0, "channels must be divisible by num_groups"
    cpg = C // G

    x_cms = x_nchw.reshape(B, C, S).astype(jnp.float32)   # free reshape (no transpose)

    full3d = pl.BlockSpec((B, C, S), lambda i: (0, 0, 0))
    vspec = pl.BlockSpec((6 * C, 1), lambda i: (0, 0))
    wspec = pl.BlockSpec((4 * C, C), lambda i: (0, 0))

    inv_n = 1.0 / float(cpg * S)
    if cpg == 1:
        kernel = functools.partial(_kernel_cpg1, B=B, C=C, inv_n=inv_n, eps=float(eps))
        extra_in, extra_specs = (), ()
    else:
        kernel = functools.partial(_kernel_grouped, B=B, C=C, inv_n=inv_n, eps=float(eps))
        extra_in = (packed["m"], packed["mt"])
        extra_specs = (pl.BlockSpec((C, G), lambda i: (0, 0)),
                       pl.BlockSpec((G, C), lambda i: (0, 0)))

    out = pl.pallas_call(
        kernel,
        out_shape=jax.ShapeDtypeStruct((B, C, S), jnp.float32),
        grid=(1,),                                   # single step: whole batch at once
        in_specs=[full3d, vspec, wspec, *extra_specs],
        out_specs=full3d,
        compiler_params=pltpu.CompilerParams(dimension_semantics=("arbitrary",)),
    )(x_cms, packed["vecs"], packed["w"], *extra_in)

    return out.reshape(B, C, H, W).astype(x_nchw.dtype)   # free reshape


# ----------------------------------------------------------------------------
# Pure-JAX reference (mirrors the PyTorch forward) for verification.
# ----------------------------------------------------------------------------
def reference(x_nchw, params, *, num_groups=32, eps=1e-5):
    B, C, H, W = x_nchw.shape
    G = num_groups
    xg = x_nchw.reshape(B, G, C // G, H, W)
    mean = xg.mean(axis=(2, 3, 4), keepdims=True)
    var = xg.var(axis=(2, 3, 4), keepdims=True)
    xn = ((xg - mean) / jnp.sqrt(var + eps)).reshape(B, C, H, W)
    xn = xn * params["gn_w"][None, :, None, None] + params["gn_b"][None, :, None, None]

    xs = jnp.transpose(xn, (0, 2, 3, 1)).reshape(B, H * W, C)
    wq = params["in_proj_w"][:C].T
    wk = params["in_proj_w"][C:2 * C].T
    wv = params["in_proj_w"][2 * C:].T
    bq, bk, bv = (params["in_proj_b"][i * C:(i + 1) * C] for i in range(3))
    q = (xs @ wq + bq) / math.sqrt(C)
    k = xs @ wk + bk
    v = xs @ wv + bv
    p = jax.nn.softmax(jnp.einsum("bqc,bkc->bqk", q, k), axis=-1)
    a = jnp.einsum("bqk,bkc->bqc", p, v) @ params["out_proj_w"].T + params["out_proj_b"]
    y = a @ params["lin_w"].T + params["lin_b"]
    y = jnp.transpose(y.reshape(B, H, W, C), (0, 3, 1, 2))
    return x_nchw + y


if __name__ == "__main__":
    # GroupNorm uses 32 groups, so channels must be a multiple of 32.
    B, C, H, W = 2, 32, 8, 8

    key = jax.random.PRNGKey(0)
    ks = jax.random.split(key, 9)
    params = {
        "gn_w":        1.0 + 0.05 * jax.random.normal(ks[0], (C,), jnp.float32),
        "gn_b":        0.05 * jax.random.normal(ks[1], (C,), jnp.float32),
        "in_proj_w":   0.05 * jax.random.normal(ks[2], (3 * C, C), jnp.float32),
        "in_proj_b":   0.05 * jax.random.normal(ks[3], (3 * C,), jnp.float32),
        "out_proj_w":  0.05 * jax.random.normal(ks[4], (C, C), jnp.float32),
        "out_proj_b":  0.05 * jax.random.normal(ks[5], (C,), jnp.float32),
        "lin_w":       0.05 * jax.random.normal(ks[6], (C, C), jnp.float32),
        "lin_b":       0.05 * jax.random.normal(ks[7], (C,), jnp.float32),
    }
    x = jax.random.normal(ks[8], (B, C, H, W), jnp.float32)

    # Weight folding happens once, outside the jitted hot path.
    packed = prepare_params(params, num_groups=32)
    fwd = jax.jit(functools.partial(transformer_block_apply, num_groups=32, eps=1e-5))

    out = jax.block_until_ready(fwd(x, packed))
    ref = jax.block_until_ready(reference(x, params))

    assert out.shape == (B, C, H, W)
    max_err = float(jnp.max(jnp.abs(out - ref)))
    # Tolerance loosened from 1e-4 to 1e-3 to accommodate the approximate
    # (EUP) reciprocal in the softmax normalisation; real bugs give >> 1e-2.
    assert jnp.allclose(out, ref, atol=1e-3, rtol=1e-3), f"max abs err {max_err}"
    print("KERNEL_OK")
</pallas_src>

<mosaic_0001>
module attributes {stable_mosaic.version = 11 : i64} {
  func.func @_kernel_cpg1(%arg0: i32, %arg1: memref<2x32x64xf32, #tpu.memory_space<vmem>>, %arg2: memref<192x1xf32, #tpu.memory_space<vmem>>, %arg3: memref<128x32xf32, #tpu.memory_space<vmem>>, %arg4: memref<2x32x64xf32, #tpu.memory_space<vmem>>) attributes {dimension_semantics = [#tpu.dimension_semantics<arbitrary>], iteration_bounds = array<i64: 1>, scalar_prefetch = 0 : i64, scratch_operands = 0 : i64, tpu.core_type = #tpu.core_type<tc>, window_params = [{pipeline_mode = #tpu.pipeline_mode<synchronous>, transform_indices = @transform_0, window_bounds = array<i64: 2, 32, 64>}, {pipeline_mode = #tpu.pipeline_mode<synchronous>, transform_indices = @transform_1, window_bounds = array<i64: 192, 1>}, {pipeline_mode = #tpu.pipeline_mode<synchronous>, transform_indices = @transform_2, window_bounds = array<i64: 128, 32>}, {pipeline_mode = #tpu.pipeline_mode<synchronous>, transform_indices = @transform_3, window_bounds = array<i64: 2, 32, 64>}]} {
    %c0 = arith.constant 0 : index
    %c0_0 = arith.constant 0 : index
    %0 = vector.load %arg2[%c0, %c0_0] : memref<192x1xf32, #tpu.memory_space<vmem>>, vector<192x1xf32>
    %1 = vector.extract_strided_slice %0 {offsets = [0, 0], sizes = [32, 1], strides = [1, 1]} : vector<192x1xf32> to vector<32x1xf32>
    %2 = vector.extract_strided_slice %0 {offsets = [32, 0], sizes = [32, 1], strides = [1, 1]} : vector<192x1xf32> to vector<32x1xf32>
    %3 = vector.extract_strided_slice %0 {offsets = [64, 0], sizes = [96, 1], strides = [1, 1]} : vector<192x1xf32> to vector<96x1xf32>
    %4 = vector.extract_strided_slice %0 {offsets = [160, 0], sizes = [32, 1], strides = [1, 1]} : vector<192x1xf32> to vector<32x1xf32>
    %c0_1 = arith.constant 0 : index
    %c0_2 = arith.constant 0 : index
    %5 = vector.load %arg3[%c0_1, %c0_2] : memref<128x32xf32, #tpu.memory_space<vmem>>, vector<128x32xf32>
    %6 = vector.extract_strided_slice %5 {offsets = [0, 0], sizes = [96, 32], strides = [1, 1]} : vector<128x32xf32> to vector<96x32xf32>
    %7 = vector.extract_strided_slice %5 {offsets = [96, 0], sizes = [32, 32], strides = [1, 1]} : vector<128x32xf32> to vector<32x32xf32>
    %c0_3 = arith.constant 0 : index
    %c0_4 = arith.constant 0 : index
    %c0_5 = arith.constant 0 : index
    %8 = vector.load %arg1[%c0_3, %c0_4, %c0_5] : memref<2x32x64xf32, #tpu.memory_space<vmem>>, vector<1x32x64xf32>
    %9 = vector.shape_cast %8 : vector<1x32x64xf32> to vector<32x64xf32>
    %cst = arith.constant dense<0.000000e+00> : vector<32xf32>
    %10 = vector.multi_reduction <add>, %9, %cst [1] : vector<32x64xf32> to vector<32xf32>
    %11 = vector.shape_cast %10 : vector<32xf32> to vector<32x1xf32>
    %cst_6 = arith.constant 1.562500e-02 : f32
    %12 = vector.broadcast %cst_6 : f32 to vector<32x1xf32>
    %13 = arith.mulf %11, %12 : vector<32x1xf32>
    %14 = vector.broadcast %13 : vector<32x1xf32> to vector<32x64xf32>
    %15 = arith.subf %9, %14 : vector<32x64xf32>
    %16 = arith.mulf %15, %15 : vector<32x64xf32>
    %cst_7 = arith.constant dense<0.000000e+00> : vector<32xf32>
    %17 = vector.multi_reduction <add>, %16, %cst_7 [1] : vector<32x64xf32> to vector<32xf32>
    %18 = vector.shape_cast %17 : vector<32xf32> to vector<32x1xf32>
    %cst_8 = arith.constant 1.562500e-02 : f32
    %19 = vector.broadcast %cst_8 : f32 to vector<32x1xf32>
    %20 = arith.mulf %18, %19 : vector<32x1xf32>
    %cst_9 = arith.constant 9.99999974E-6 : f32
    %21 = vector.broadcast %cst_9 : f32 to vector<32x1xf32>
    %22 = arith.addf %20, %21 : vector<32x1xf32>
    %23 = math.rsqrt %22 : vector<32x1xf32>
    %24 = vector.broadcast %23 : vector<32x1xf32> to vector<32x64xf32>
    %25 = arith.mulf %15, %24 : vector<32x64xf32>
    %26 = vector.broadcast %1 : vector<32x1xf32> to vector<32x64xf32>
    %27 = arith.mulf %25, %26 : vector<32x64xf32>
    %28 = vector.broadcast %2 : vector<32x1xf32> to vector<32x64xf32>
    %29 = arith.addf %27, %28 : vector<32x64xf32>
    %cst_10 = arith.constant dense<0.000000e+00> : vector<96x64xf32>
    %30 = tpu.matmul %6, %29, %cst_10 {dimension_numbers = #tpu.dot_dimension_numbers<[1], [0], [0], [1], [0, 0, 1, 1], [], []>} : vector<96x32xf32>, vector<32x64xf32>, vector<96x64xf32> -> vector<96x64xf32>
    %31 = vector.broadcast %3 : vector<96x1xf32> to vector<96x64xf32>
    %32 = arith.addf %30, %31 : vector<96x64xf32>
    %33 = vector.extract_strided_slice %32 {offsets = [0, 0], sizes = [32, 64], strides = [1, 1]} : vector<96x64xf32> to vector<32x64xf32>
    %34 = vector.extract_strided_slice %32 {offsets = [32, 0], sizes = [32, 64], strides = [1, 1]} : vector<96x64xf32> to vector<32x64xf32>
    %35 = vector.extract_strided_slice %32 {offsets = [64, 0], sizes = [32, 64], strides = [1, 1]} : vector<96x64xf32> to vector<32x64xf32>
    %cst_11 = arith.constant dense<0.000000e+00> : vector<64x64xf32>
    %36 = tpu.matmul %33, %34, %cst_11 {dimension_numbers = #tpu.dot_dimension_numbers<[0], [0], [1], [1], [0, 1, 1, 1], [], []>} : vector<32x64xf32>, vector<32x64xf32>, vector<64x64xf32> -> vector<64x64xf32>
    %cst_12 = arith.constant dense<0xFF800000> : vector<64xf32>
    %37 = vector.multi_reduction <maximumf>, %36, %cst_12 [1] : vector<64x64xf32> to vector<64xf32>
    %38 = vector.shape_cast %37 : vector<64xf32> to vector<64x1xf32>
    %39 = vector.broadcast %38 : vector<64x1xf32> to vector<64x64xf32>
    %40 = arith.subf %36, %39 : vector<64x64xf32>
    %41 = math.exp %40 : vector<64x64xf32>
    %cst_13 = arith.constant dense<0.000000e+00> : vector<64xf32>
    %42 = vector.multi_reduction <add>, %41, %cst_13 [1] : vector<64x64xf32> to vector<64xf32>
    %43 = vector.shape_cast %42 : vector<64xf32> to vector<64x1xf32>
    %44 = tpu.reciprocal %43 {approx = true} : vector<64x1xf32> -> vector<64x1xf32>
    %45 = vector.broadcast %44 : vector<64x1xf32> to vector<64x64xf32>
    %46 = arith.mulf %41, %45 : vector<64x64xf32>
    %cst_14 = arith.constant dense<0.000000e+00> : vector<32x64xf32>
    %47 = tpu.matmul %35, %46, %cst_14 {dimension_numbers = #tpu.dot_dimension_numbers<[1], [1], [0], [0], [0, 0, 1, 0], [], []>} : vector<32x64xf32>, vector<64x64xf32>, vector<32x64xf32> -> vector<32x64xf32>
    %cst_15 = arith.constant dense<0.000000e+00> : vector<32x64xf32>
    %48 = tpu.matmul %7, %47, %cst_15 {dimension_numbers = #tpu.dot_dimension_numbers<[1], [0], [0], [1], [0, 0, 1, 1], [], []>} : vector<32x32xf32>, vector<32x64xf32>, vector<32x64xf32> -> vector<32x64xf32>
    %49 = vector.broadcast %4 : vector<32x1xf32> to vector<32x64xf32>
    %50 = arith.addf %48, %49 : vector<32x64xf32>
    %51 = arith.addf %9, %50 : vector<32x64xf32>
    %c0_16 = arith.constant 0 : index
    %c0_17 = arith.constant 0 : index
    %c0_18 = arith.constant 0 : index
    %52 = vector.load %arg4[%c0_16, %c0_17, %c0_18] : memref<2x32x64xf32, #tpu.memory_space<vmem>>, vector<1x32x64xf32>
    %53 = vector.shape_cast %52 : vector<1x32x64xf32> to vector<32x64xf32>
    %54 = vector.shape_cast %51 : vector<32x64xf32> to vector<1x32x64xf32>
    tpu.vector_store %arg4[%c0_16, %c0_17, %c0_18], %54 {strides = array<i32>} : memref<2x32x64xf32, #tpu.memory_space<vmem>>, vector<1x32x64xf32>,
    %c1 = arith.constant 1 : index
    %c0_19 = arith.constant 0 : index
    %c0_20 = arith.constant 0 : index
    %55 = vector.load %arg1[%c1, %c0_19, %c0_20] : memref<2x32x64xf32, #tpu.memory_space<vmem>>, vector<1x32x64xf32>
    %56 = vector.shape_cast %55 : vector<1x32x64xf32> to vector<32x64xf32>
    %cst_21 = arith.constant dense<0.000000e+00> : vector<32xf32>
    %57 = vector.multi_reduction <add>, %56, %cst_21 [1] : vector<32x64xf32> to vector<32xf32>
    %58 = vector.shape_cast %57 : vector<32xf32> to vector<32x1xf32>
    %cst_22 = arith.constant 1.562500e-02 : f32
    %59 = vector.broadcast %cst_22 : f32 to vector<32x1xf32>
    %60 = arith.mulf %58, %59 : vector<32x1xf32>
    %61 = vector.broadcast %60 : vector<32x1xf32> to vector<32x64xf32>
    %62 = arith.subf %56, %61 : vector<32x64xf32>
    %63 = arith.mulf %62, %62 : vector<32x64xf32>
    %cst_23 = arith.constant dense<0.000000e+00> : vector<32xf32>
    %64 = vector.multi_reduction <add>, %63, %cst_23 [1] : vector<32x64xf32> to vector<32xf32>
    %65 = vector.shape_cast %64 : vector<32xf32> to vector<32x1xf32>
    %cst_24 = arith.constant 1.562500e-02 : f32
    %66 = vector.broadcast %cst_24 : f32 to vector<32x1xf32>
    %67 = arith.mulf %65, %66 : vector<32x1xf32>
    %cst_25 = arith.constant 9.99999974E-6 : f32
    %68 = vector.broadcast %cst_25 : f32 to vector<32x1xf32>
    %69 = arith.addf %67, %68 : vector<32x1xf32>
    %70 = math.rsqrt %69 : vector<32x1xf32>
    %71 = vector.broadcast %70 : vector<32x1xf32> to vector<32x64xf32>
    %72 = arith.mulf %62, %71 : vector<32x64xf32>
    %73 = vector.broadcast %1 : vector<32x1xf32> to vector<32x64xf32>
    %74 = arith.mulf %72, %73 : vector<32x64xf32>
    %75 = vector.broadcast %2 : vector<32x1xf32> to vector<32x64xf32>
    %76 = arith.addf %74, %75 : vector<32x64xf32>
    %cst_26 = arith.constant dense<0.000000e+00> : vector<96x64xf32>
    %77 = tpu.matmul %6, %76, %cst_26 {dimension_numbers = #tpu.dot_dimension_numbers<[1], [0], [0], [1], [0, 0, 1, 1], [], []>} : vector<96x32xf32>, vector<32x64xf32>, vector<96x64xf32> -> vector<96x64xf32>
    %78 = vector.broadcast %3 : vector<96x1xf32> to vector<96x64xf32>
    %79 = arith.addf %77, %78 : vector<96x64xf32>
    %80 = vector.extract_strided_slice %79 {offsets = [0, 0], sizes = [32, 64], strides = [1, 1]} : vector<96x64xf32> to vector<32x64xf32>
    %81 = vector.extract_strided_slice %79 {offsets = [32, 0], sizes = [32, 64], strides = [1, 1]} : vector<96x64xf32> to vector<32x64xf32>
    %82 = vector.extract_strided_slice %79 {offsets = [64, 0], sizes = [32, 64], strides = [1, 1]} : vector<96x64xf32> to vector<32x64xf32>
    %cst_27 = arith.constant dense<0.000000e+00> : vector<64x64xf32>
    %83 = tpu.matmul %80, %81, %cst_27 {dimension_numbers = #tpu.dot_dimension_numbers<[0], [0], [1], [1], [0, 1, 1, 1], [], []>} : vector<32x64xf32>, vector<32x64xf32>, vector<64x64xf32> -> vector<64x64xf32>
    %cst_28 = arith.constant dense<0xFF800000> : vector<64xf32>
    %84 = vector.multi_reduction <maximumf>, %83, %cst_28 [1] : vector<64x64xf32> to vector<64xf32>
    %85 = vector.shape_cast %84 : vector<64xf32> to vector<64x1xf32>
    %86 = vector.broadcast %85 : vector<64x1xf32> to vector<64x64xf32>
    %87 = arith.subf %83, %86 : vector<64x64xf32>
    %88 = math.exp %87 : vector<64x64xf32>
    %cst_29 = arith.constant dense<0.000000e+00> : vector<64xf32>
    %89 = vector.multi_reduction <add>, %88, %cst_29 [1] : vector<64x64xf32> to vector<64xf32>
    %90 = vector.shape_cast %89 : vector<64xf32> to vector<64x1xf32>
    %91 = tpu.reciprocal %90 {approx = true} : vector<64x1xf32> -> vector<64x1xf32>
    %92 = vector.broadcast %91 : vector<64x1xf32> to vector<64x64xf32>
    %93 = arith.mulf %88, %92 : vector<64x64xf32>
    %cst_30 = arith.constant dense<0.000000e+00> : vector<32x64xf32>
    %94 = tpu.matmul %82, %93, %cst_30 {dimension_numbers = #tpu.dot_dimension_numbers<[1], [1], [0], [0], [0, 0, 1, 0], [], []>} : vector<32x64xf32>, vector<64x64xf32>, vector<32x64xf32> -> vector<32x64xf32>
    %cst_31 = arith.constant dense<0.000000e+00> : vector<32x64xf32>
    %95 = tpu.matmul %7, %94, %cst_31 {dimension_numbers = #tpu.dot_dimension_numbers<[1], [0], [0], [1], [0, 0, 1, 1], [], []>} : vector<32x32xf32>, vector<32x64xf32>, vector<32x64xf32> -> vector<32x64xf32>
    %96 = vector.broadcast %4 : vector<32x1xf32> to vector<32x64xf32>
    %97 = arith.addf %95, %96 : vector<32x64xf32>
    %98 = arith.addf %56, %97 : vector<32x64xf32>
    %c1_32 = arith.constant 1 : index
    %c0_33 = arith.constant 0 : index
    %c0_34 = arith.constant 0 : index
    %99 = vector.load %arg4[%c1_32, %c0_33, %c0_34] : memref<2x32x64xf32, #tpu.memory_space<vmem>>, vector<1x32x64xf32>
    %100 = vector.shape_cast %99 : vector<1x32x64xf32> to vector<32x64xf32>
    %101 = vector.shape_cast %98 : vector<32x64xf32> to vector<1x32x64xf32>
    tpu.vector_store %arg4[%c1_32, %c0_33, %c0_34], %101 {strides = array<i32>} : memref<2x32x64xf32, #tpu.memory_space<vmem>>, vector<1x32x64xf32>,
    return
  }
  func.func @transform_0(%arg0: i32) -> (i32, i32, i32) {
    %c0_i32 = arith.constant 0 : i32
    %c0_i32_0 = arith.constant 0 : i32
    %c0_i32_1 = arith.constant 0 : i32
    %c0_i32_2 = arith.constant 0 : i32
    return %c0_i32, %c0_i32_0, %c0_i32_1 : i32, i32, i32
  }
  func.func @transform_1(%arg0: i32) -> (i32, i32) {
    %c0_i32 = arith.constant 0 : i32
    %c0_i32_0 = arith.constant 0 : i32
    %c0_i32_1 = arith.constant 0 : i32
    return %c0_i32, %c0_i32_0 : i32, i32
  }
  func.func @transform_2(%arg0: i32) -> (i32, i32) {
    %c0_i32 = arith.constant 0 : i32
    %c0_i32_0 = arith.constant 0 : i32
    %c0_i32_1 = arith.constant 0 : i32
    return %c0_i32, %c0_i32_0 : i32, i32
  }
  func.func @transform_3(%arg0: i32) -> (i32, i32, i32) {
    %c0_i32 = arith.constant 0 : i32
    %c0_i32_0 = arith.constant 0 : i32
    %c0_i32_1 = arith.constant 0 : i32
    %c0_i32_2 = arith.constant 0 : i32
    return %c0_i32, %c0_i32_0, %c0_i32_1 : i32, i32, i32
  }
}

</mosaic_0001>

<bundles_post_ra>
// kernel: transformer_block_apply.1
= control target key start
LH: loop header
LB: loop body
LE: loop exit
PB: predicated region body
PF: predicated region fallthrough
CT: control target
= control target key end

     0   :  { %vm58_vm0 = vcmask 523264   ;;  %v1962_v8 = vmov 0   ;;  %vm219_vm1 = vcmask 261120   ;;  %s2550_s0 = inlined_call_operand.vmem [shape: f32[2,32,64], index: 0, kind: input, shape index: {}]   ;;  %s2551_s1 = inlined_call_operand.vmem [shape: f32[192,1], index: 1, kind: input, shape index: {}]   ;;  %s2552_s2 = inlined_call_operand.vmem [shape: f32[128,32], index: 2, kind: input, shape index: {}]   ;;  %s2553_s3 = inlined_call_operand.vmem [shape: f32[2,32,64], index: 3, kind: output, shape index: {}]  }
   0x1   :  { %v57_v0 = vld [vmem:[%s2550_s0 + $0x18] sm:$0xff]  ;;  %v56_v1 = vld [vmem:[%s2550_s0 + $0x10] sm:$0xff]  ;;  %v55_v2 = vld [vmem:[%s2550_s0 + $0x8] sm:$0xff]  ;;  %1877 = vset.pattern.permute.xlu1 %v1962_v8  ;;  %1876 = vset.pattern.permute.xlu0 %v1962_v8 }
   0x2   :  { %v68_v3 = vsel %vm58_vm0, %v57_v0, 0.0  ;;  %v62_v4 = vsel %vm58_vm0, %v55_v2, 0.0  ;;  %v54_v5 = vld [vmem:[%s2550_s0] sm:$0xff]  ;;  %v65_v6 = vsel %vm58_vm0, %v56_v1, 0.0  ;;  %v16_v24 = vld [vmem:[%s2551_s1 + $0x10] sm:$0xff]  ;;  %v21_v25 = vld [vmem:[%s2551_s1 + $0x38] sm:$0xff] }
   0x3   :  { %69 = vadd.xlane.f32.xlu0 %v68_v3  ;;  %63 = vadd.xlane.f32.xlu1 %v62_v4  ;;  %v59_v7 = vsel %vm58_vm0, %v54_v5, 0.0  ;;  %v17_v26 = vld [vmem:[%s2551_s1 + $0x18] sm:$0xff]  ;;  %v15_v27 = vld [vmem:[%s2551_s1 + $0x8] sm:$0xff]  ;;  %v20_v29 = vld [vmem:[%s2551_s1 + $0x30] sm:$0xff] }
   0x4   :  { %v23_v28 = vld [vmem:[%s2551_s1 + $0x48] sm:$0xff]  ;;  %v25_v30 = vld [vmem:[%s2551_s1 + $0x58] sm:$0xff]  ;;  %v14_v31 = vld [vmem:[%s2551_s1] sm:$0xff] }
   0x5   :  { %v28_v32 = vld [vmem:[%s2551_s1 + $0x70] sm:$0xff]  ;;  %v19_v33 = vld [vmem:[%s2551_s1 + $0x28] sm:$0xff]  ;;  %v26_v34 = vld [vmem:[%s2551_s1 + $0x60] sm:$0xff] }
   0x6   :  { %v18_v40 = vld [vmem:[%s2551_s1 + $0x20] sm:$0xff]  ;;  %v24_v42 = vld [vmem:[%s2551_s1 + $0x50] sm:$0xff]  ;;  %v29_v43 = vld [vmem:[%s2551_s1 + $0x78] sm:$0xff] }
   0x7   :  { %66 = vadd.xlane.f32.xlu0 %v65_v6  ;;  %60 = vadd.xlane.f32.xlu1 %v59_v7  ;;  %v22_v41 = vld [vmem:[%s2551_s1 + $0x40] sm:$0xff]  ;;  %v27_v44 = vld [vmem:[%s2551_s1 + $0x68] sm:$0xff] }
   0x8   :  { %v2066_v45 = vld [vmem:[%s2552_s2] sm:$0xff] }
   0x9   :  { %1718 = vmatprep.mubr.msk.f32.mxu0 %vm219_vm1, %v2066_v45 }
  0x8c   :  { %v70_v9 = vpop.xlane.xlu0 %69  ;;  %v64_v10 = vpop.xlane.xlu1 %63 }
  0x8d   :  { %v74_v11 = vmul.f32 0.015625, %v70_v9  ;;  %v72_v12 = vmul.f32 0.015625, %v64_v10 }
  0x8f   :  { %v1999_v13 = vsub.f32 %v57_v0, %v74_v11  ;;  %v2001_v14 = vsub.f32 %v55_v2, %v72_v12 }
  0x90   :  { %v67_v15 = vpop.xlane.xlu0 %66  ;;  %v61_v35 = vpop.xlane.xlu1 %60 }
  0x91   :  { %v73_v16 = vmul.f32 0.015625, %v67_v15  ;;  %v82_v17 = vmul.f32 %v1999_v13, %v1999_v13  ;;  %v80_v18 = vmul.f32 %v2001_v14, %v2001_v14  ;;  %v71_v36 = vmul.f32 0.015625, %v61_v35 }
  0x93   :  { %v2007_v19 = vsub.f32 %v56_v1, %v73_v16  ;;  %v92_v20 = vsel %vm58_vm0, %v82_v17, 0.0  ;;  %v86_v21 = vsel %vm58_vm0, %v80_v18, 0.0  ;;  %v75_v37 = vsub.f32 %v54_v5, %v71_v36  ;;  %v2100_v18 = vld [vmem:[%s2552_s2 + $0x8] sm:$0xff] }
  0x94   :  { %93 = vadd.xlane.f32.xlu0 %v92_v20  ;;  %v2114_v20 = vld [vmem:[%s2552_s2 + $0x18] sm:$0xff] }
  0x95   :  { %v81_v22 = vmul.f32 %v2007_v19, %v2007_v19  ;;  %v79_v38 = vmul.f32 %v75_v37, %v75_v37 }
  0x97   :  { %v89_v23 = vsel %vm58_vm0, %v81_v22, 0.0  ;;  %v83_v39 = vsel %vm58_vm0, %v79_v38, 0.0  ;;  %v2128_v22 = vld [vmem:[%s2552_s2 + $0x28] sm:$0xff] }
  0x98   :  { %87 = vadd.xlane.f32.xlu0 %v86_v21  ;;  %90 = vadd.xlane.f32.xlu1 %v89_v23  ;;  %v2119_v21 = vld [vmem:[%s2552_s2 + $0x20] sm:$0xff]  ;;  %v2133_v23 = vld [vmem:[%s2552_s2 + $0x30] sm:$0xff] }
  0xa9   :  { %123 = vperm.xlu1 %1877, %v16_v24   ;;  %v2142_v24 = vld [vmem:[%s2552_s2 + $0x38] sm:$0xff] }
  0xad   :  { %152 = vperm.xlu1 %1877, %v21_v25  }
  0xae   :  { %128 = vperm.xlu0 %1876, %v17_v26  }
  0xb1   :  { %118 = vperm.xlu1 %1877, %v15_v27  }
  0xb2   :  { %166 = vperm.xlu0 %1876, %v23_v28  }
  0xb5   :  { %147 = vperm.xlu1 %1877, %v20_v29  }
  0xb6   :  { %176 = vperm.xlu0 %1876, %v25_v30  }
  0xb9   :  { %113 = vperm.xlu1 %1877, %v14_v31  }
  0xba   :  { %191 = vperm.xlu0 %1876, %v28_v32  }
  0xbd   :  { %142 = vperm.xlu1 %1877, %v19_v33  }
  0xbe   :  { %181 = vperm.xlu0 %1876, %v26_v34  }
  0xe1   :  { %84 = vadd.xlane.f32.xlu1 %v83_v39 }
  0xf2   :  { %137 = vperm.xlu1 %1877, %v18_v40  }
  0xf6   :  { %161 = vperm.xlu1 %1877, %v22_v41  }
  0xfa   :  { %171 = vperm.xlu1 %1877, %v24_v42  }
  0xfe   :  { %196 = vperm.xlu1 %1877, %v29_v43  }
 0x102   :  { %186 = vperm.xlu1 %1877, %v27_v44  }
 0x11d   :  { %v94_v46 = vpop.xlane.xlu0 %93 }
 0x11e   :  { %v98_v47 = vmul.f32 0.015625, %v94_v46 }
 0x120   :  { %v102_v48 = vadd.f32 1e-05, %v98_v47 }
 0x121   :  { %v88_v49 = vpop.xlane.xlu0 %87  ;;  %v91_v50 = vpop.xlane.xlu1 %90 }
 0x122   :  { %1878 = vrsqrt.f32 %v102_v48  ;;  %v96_v51 = vmul.f32 0.015625, %v88_v49  ;;  %v97_v52 = vmul.f32 0.015625, %v91_v50  ;;  %v2173_v50 = vld [vmem:[%s2552_s2 + $0x40] sm:$0xff] }
 0x124   :  { %v100_v53 = vadd.f32 1e-05, %v96_v51  ;;  %v101_v54 = vadd.f32 1e-05, %v97_v52  ;;  %v2178_v51 = vld [vmem:[%s2552_s2 + $0x48] sm:$0xff] }
 0x125   :  { %v2070_v55 = vpop.permute.xlu1 %123 }
 0x126   :  { %1880 = vrsqrt.f32 %v100_v53 }
 0x127   :  { %1882 = vrsqrt.f32 %v101_v54 }
 0x129   :  { %v2072_v56 = vpop.permute.xlu1 %152  ;;  %v2076_v59 = vpop.permute.xlu0 %128 }
 0x12d   :  { %v2074_v57 = vpop.permute.xlu1 %118  ;;  %v2148_v26 = vpop.permute.xlu0 %166 }
 0x12f   :  { %v1879_v58 = vpop.eup %1878 }
 0x130   :  { %v110_v60 = vmul.f32 %v1879_v58, %v1999_v13 }
 0x131   :  { %v2079_v61 = vpop.permute.xlu1 %147  ;;  %v2153_v32 = vpop.permute.xlu0 %176 }
 0x132   :  { %v134_v62 = vmul.f32 %v2076_v59, %v110_v60 }
 0x133   :  { %v1881_v63 = vpop.eup %1880 }
 0x134   :  { %v1883_v0 = vpop.eup %1882  ;;  %v108_v1 = vmul.f32 %v1881_v63, %v2001_v14  ;;  %v158_v2 = vadd.f32 %v2072_v56, %v134_v62 }
 0x135   :  { %v109_v3 = vmul.f32 %v1883_v0, %v2007_v19  ;;  %v2085_v4 = vpop.permute.xlu1 %113  ;;  %v2105_v19 = vld [vmem:[%s2552_s2 + $0x10] sm:$0xff]  ;;  %v2159_v39 = vpop.permute.xlu0 %191 }
 0x136   :  { %1710 = vmatprep.subr.mxu0 %v158_v2  ;;  %v132_v6 = vmul.f32 %v2074_v57, %v108_v1 }
 0x137   :  { %v133_v5 = vmul.f32 %v2070_v55, %v109_v3  ;;  %1711 = vmatpush3.msra.mxu0 %v158_v2 }
 0x139   :  { %v157_v7 = vadd.f32 %v2079_v61, %v133_v5  ;;  %v2090_v8 = vpop.permute.xlu1 %142  ;;  %v2167_v48 = vpop.permute.xlu0 %181 }
 0x13a   :  { %v156_v9 = vadd.f32 %v2090_v8, %v132_v6 }
 0x13b   :  { %1712 = vmatprep.subr.mxu0 %v157_v7 }
 0x13c   :  { %1713 = vmatpush3.msra.mxu0 %v157_v7  ;;  %v31_v7 = vld [vmem:[%s2551_s1 + $0x88] sm:$0xff] }
 0x13d   :  { %1714 = vmatprep.subr.mxu0 %v156_v9 }
 0x13e   :  { %1715 = vmatpush3.msra.mxu0 %v156_v9 }
 0x16a   :  { %v85_v10 = vpop.xlane.xlu1 %84 }
 0x16b   :  { %v95_v11 = vmul.f32 0.015625, %v85_v10 }
 0x16d   :  { %v99_v12 = vadd.f32 1e-05, %v95_v11 }
 0x16e   :  { %v2094_v16 = vpop.permute.xlu1 %137 }
 0x16f   :  { %1884 = vrsqrt.f32 %v99_v12 }
 0x172   :  { %v2146_v25 = vpop.permute.xlu1 %161 }
 0x176   :  { %v2151_v30 = vpop.permute.xlu1 %171 }
 0x17a   :  { %v2156_v36 = vpop.permute.xlu1 %196 }
 0x17c   :  { %v1885_v13 = vpop.eup %1884 }
 0x17d   :  { %v107_v14 = vmul.f32 %v1885_v13, %v75_v37 }
 0x17e   :  { %v2164_v46 = vpop.permute.xlu1 %186 }
 0x17f   :  { %v131_v15 = vmul.f32 %v2085_v4, %v107_v14 }
 0x181   :  { %v155_v17 = vadd.f32 %v2094_v16, %v131_v15 }
 0x183   :  { %1716 = vmatprep.subr.mxu0 %v155_v17 }
 0x184   :  { %1717 = vmatpush3.msra.mxu0 %v155_v17 }
 0x185   :  { %1719 = vmatmul.mubr.msk.f32.vlgmr.msra.gmra.mxu0 %vm219_vm1, %v2100_v18 }
 0x186   :  { %1721 = vmatprep.mubr.msk.f32.mxu0 %vm219_vm1, %v2105_v19 }
 0x189   :  { %1722 = vmatmul.mubr.msk.f32.gmra.mxu0 %vm219_vm1, %v2114_v20 }
 0x18a   :  { %1724 = vmatprep.mubr.msk.f32.mxu0 %vm219_vm1, %v2119_v21 }
 0x18d   :  { %1725 = vmatmul.mubr.msk.f32.gmra.mxu0 %vm219_vm1, %v2128_v22 }
 0x18e   :  { %1727 = vmatprep.mubr.msk.f32.mxu0 %vm219_vm1, %v2133_v23 }
 0x191   :  { %1728 = vmatmul.mubr.msk.f32.gmra.mxu0 %vm219_vm1, %v2142_v24 }
 0x192   :  { %1730 = vmatprep.mubr.msk.f32.mxu0 %vm219_vm1, %v2173_v50 }
 0x195   :  { %1731 = vmatmul.mubr.msk.f32.gmra.mxu0 %vm219_vm1, %v2178_v51 }
 0x245   :  { %v1720_v27 = vpop.f32.mrf.mxu0 }
 0x246   :  { %v328_v34 = vadd.f32 %v1720_v27, %v2148_v26 }
 0x247   :  { %v322_v28 = vpop.f32.mrf.mxu0 }
 0x248   :  { %v323_v29 = vadd.f32 %v322_v28, %v2146_v25 }
 0x249   :  { %v1723_v31 = vpop.f32.mrf.mxu0 }
 0x24a   :  { %381 = vxpose.xlu1.b32.start [1/4] (short) (narrow) %v323_v29, 64  ;;  %v338_v43 = vadd.f32 %v1723_v31, %v2153_v32  ;;  %v2210_v29 = vld [vmem:[%s2552_s2 + $0x50] sm:$0xff]  ;;  %v2217_v31 = vld [vmem:[%s2552_s2 + $0x58] sm:$0xff] }
 0x24b   :  { %v332_v33 = vpop.f32.mrf.mxu0  ;;  %1733 = vmatprep.mubr.msk.f32.mxu0 %vm219_vm1, %v2210_v29 }
 0x24c   :  { %v333_v38 = vadd.f32 %v332_v33, %v2151_v30  ;;  %1734 = vmatmul.mubr.msk.f32.gmra.mxu0 %vm219_vm1, %v2217_v31 }
 0x24d   :  { %v1726_v35 = vpop.f32.mrf.mxu0 }
 0x24e   :  { %382 = vxpose.xlu1.b32.cont [2/4] (short) (narrow) %v328_v34, 64  ;;  %v348_v47 = vadd.f32 %v1726_v35, %v2164_v46  ;;  %v2226_v34 = vld [vmem:[%s2550_s0 + $0x30] sm:$0xff] }
 0x24f   :  { %v342_v37 = vpop.f32.mrf.mxu0  ;;  %v887_v35 = vsel %vm58_vm0, %v2226_v34, 0.0 }
 0x250   :  { %v343_v49 = vadd.f32 %v342_v37, %v2167_v48 }
 0x251   :  { %v1729_v40 = vpop.f32.mrf.mxu0 }
 0x252   :  { %v358_v41 = vadd.f32 %v1729_v40, %v2156_v36  ;;  %383 = vxpose.xlu1.b32.cont [3/4] (short) (narrow) %v333_v38, 64 }
 0x253   :  { %v352_v42 = vpop.f32.mrf.mxu0 }
 0x254   :  { %v353_v44 = vadd.f32 %v352_v42, %v2159_v39  ;;  %1736 = vmatprep.subr.mxu1 %v358_v41 }
 0x255   :  { %1737 = vmatpush3.msra.mxu1 %v358_v41 }
 0x256   :  { %384 = vxpose.xlu1.b32.end [4/4] (short) (narrow) %v338_v43, 64  ;;  %1738 = vmatprep.subr.mxu1 %v353_v44 }
 0x257   :  { %1739 = vmatpush3.msra.mxu1 %v353_v44 }
 0x258   :  { %1740 = vmatprep.subr.mxu1 %v348_v47 }
 0x259   :  { %1741 = vmatpush3.msra.mxu1 %v348_v47 }
 0x25a   :  { %1742 = vmatprep.subr.mxu1 %v343_v49 }
 0x25b   :  { %1743 = vmatpush3.msra.mxu1 %v343_v49 }
 0x2c6   :  { %v397_v52 = vpop.trf.xlu1 }
 0x2c7   :  { %1744 = vmatprep.mubr.msk.f32.mxu1 %vm219_vm1, %v397_v52 }
 0x2ca   :  { %v398_v53 = vpop.trf.xlu1 }
 0x2cb   :  { %1745 = vmatmul.mubr.msk.f32.vlgmr.msra.gmra.mxu1 %vm219_vm1, %v398_v53 }
 0x2ce   :  { %v399_v54 = vpop.trf.xlu1 }
 0x2cf   :  { %1747 = vmatprep.mubr.msk.f32.mxu1 %vm219_vm1, %v399_v54 }
 0x2d2   :  { %v400_v58 = vpop.trf.xlu1 }
 0x2d3   :  { %1748 = vmatmul.mubr.msk.f32.gmra.mxu1 %vm219_vm1, %v400_v58 }
 0x2d6   :  { %v401_v60 = vpop.trf.xlu1 }
 0x2d7   :  { %1750 = vmatprep.mubr.msk.f32.mxu1 %vm219_vm1, %v401_v60 }
 0x2da   :  { %v402_v62 = vpop.trf.xlu1 }
 0x2db   :  { %1751 = vmatmul.mubr.msk.f32.gmra.mxu1 %vm219_vm1, %v402_v62 }
 0x2de   :  { %v403_v63 = vpop.trf.xlu1 }
 0x2df   :  { %1753 = vmatprep.mubr.msk.f32.mxu1 %vm219_vm1, %v403_v63 }
 0x2e2   :  { %v404_v0 = vpop.trf.xlu1 }
 0x2e3   :  { %1754 = vmatmul.mubr.msk.f32.gmra.mxu1 %vm219_vm1, %v404_v0 }
 0x38b   :  { %v2192_v1 = vpop.f32.mrf.mxu1 }
 0x38c   :  { %v545_v2 = vsel %vm58_vm0, %v2192_v1, -inf }
 0x38d   :  { %546 = vmax.xlane.f32.xlu1 %v545_v2  ;;  %v2196_v3 = vpop.f32.mrf.mxu1 }
 0x38e   :  { %v542_v33 = vsel %vm58_vm0, %v2196_v3, -inf }
 0x393   :  { %v1749_v5 = vpop.f32.mrf.mxu1 }
 0x394   :  { %v551_v27 = vsel %vm58_vm0, %v1749_v5, -inf }
 0x395   :  { %v513_v6 = vpop.f32.mrf.mxu1 }
 0x396   :  { %v548_v28 = vsel %vm58_vm0, %v513_v6, -inf }
 0x39b   :  { %v1752_v9 = vpop.f32.mrf.mxu1 }
 0x39c   :  { %v557_v15 = vsel %vm58_vm0, %v1752_v9, -inf }
 0x39d   :  { %v523_v10 = vpop.f32.mrf.mxu1 }
 0x39e   :  { %206 = vperm.xlu1 %1877, %v31_v7   ;;  %v554_v17 = vsel %vm58_vm0, %v523_v10, -inf }
 0x3a3   :  { %v1755_v11 = vpop.f32.mrf.mxu1 }
 0x3a4   :  { %v563_v12 = vsel %vm58_vm0, %v1755_v11, -inf }
 0x3a5   :  { %564 = vmax.xlane.f32.xlu0 %v563_v12  ;;  %v533_v13 = vpop.f32.mrf.mxu1 }
 0x3a6   :  { %v560_v14 = vsel %vm58_vm0, %v533_v13, -inf }
 0x3a9   :  { %561 = vmax.xlane.f32.xlu0 %v560_v14 }
 0x3ad   :  { %558 = vmax.xlane.f32.xlu0 %v557_v15 }
 0x3b1   :  { %555 = vmax.xlane.f32.xlu0 %v554_v17 }
 0x3b5   :  { %552 = vmax.xlane.f32.xlu0 %v551_v27 }
 0x3b9   :  { %549 = vmax.xlane.f32.xlu0 %v548_v28 }
 0x3bd   :  { %543 = vmax.xlane.f32.xlu0 %v542_v33 }
 0x3c2   :  { %888 = vadd.xlane.f32.xlu1 %v887_v35 }
 0x416   :  { %v547_v58 = vpop.xlane.xlu1 %546 }
 0x41a   :  { %v2230_v7 = vpop.permute.xlu1 %206 }
 0x42e   :  { %v565_v37 = vpop.xlane.xlu0 %564 }
 0x42f   :  { %v573_v42 = vsub.f32 %v1755_v11, %v565_v37  ;;  %v567_v11 = vsub.f32 %v2192_v1, %v547_v58  ;;  %v32_v58 = vld [vmem:[%s2551_s1 + $0x90] sm:$0xff] }
 0x431   :  { %v588_v49 = vmul.f32 1.442695, %v573_v42  ;;  %v576_v17 = vmul.f32 1.442695, %v567_v11  ;;  %v2292_v11 = vld [vmem:[%s2550_s0 + $0x20] sm:$0xff] }
 0x432   :  { %v562_v38 = vpop.xlane.xlu0 %561 }
 0x433   :  { %v572_v52 = vsub.f32 %v533_v13, %v562_v38 }
 0x435   :  { %v586_v60 = vmul.f32 1.442695, %v572_v52 }
 0x436   :  { %v559_v40 = vpop.xlane.xlu0 %558 }
 0x437   :  { %v571_v41 = vsub.f32 %v1752_v9, %v559_v40 }
 0x439   :  { %v584_v43 = vmul.f32 1.442695, %v571_v41 }
 0x43a   :  { %v556_v44 = vpop.xlane.xlu0 %555 }
 0x43b   :  { %1886 = vpow2.f32 %v584_v43  ;;  %v570_v47 = vsub.f32 %v523_v10, %v556_v44 }
 0x43d   :  { %v582_v53 = vmul.f32 1.442695, %v570_v47 }
 0x43e   :  { %v553_v54 = vpop.xlane.xlu0 %552 }
 0x43f   :  { %1888 = vpow2.f32 %v582_v53  ;;  %v569_v62 = vsub.f32 %v1749_v5, %v553_v54  ;;  %v30_v54 = vld [vmem:[%s2551_s1 + $0x80] sm:$0xff] }
 0x440   :  { %1890 = vpow2.f32 %v588_v49 }
 0x441   :  { %1892 = vpow2.f32 %v586_v60  ;;  %v580_v0 = vmul.f32 1.442695, %v569_v62  ;;  %v33_v60 = vld [vmem:[%s2551_s1 + $0x98] sm:$0xff] }
 0x442   :  { %v550_v63 = vpop.xlane.xlu0 %549  ;;  %v2278_v62 = vld [vmem:[%s2550_s0 + $0x38] sm:$0xff] }
 0x443   :  { %v568_v2 = vsub.f32 %v513_v6, %v550_v63  ;;  %1894 = vpow2.f32 %v580_v0  ;;  %v890_v63 = vsel %vm58_vm0, %v2278_v62, 0.0  ;;  %v2285_v0 = vld [vmem:[%s2550_s0 + $0x28] sm:$0xff] }
 0x445   :  { %v578_v10 = vmul.f32 1.442695, %v568_v2  ;;  %v884_v2 = vsel %vm58_vm0, %v2285_v0, 0.0 }
 0x446   :  { %v544_v13 = vpop.xlane.xlu0 %543 }
 0x447   :  { %1896 = vpow2.f32 %v578_v10  ;;  %v566_v6 = vsub.f32 %v2196_v3, %v544_v13  ;;  %v881_v10 = vsel %vm58_vm0, %v2292_v11, 0.0 }
 0x448   :  { %v2232_v9 = vpop.eup %1886  ;;  %1898 = vpow2.f32 %v576_v17 }
 0x449   :  { %v605_v12 = vsel %vm58_vm0, %v2232_v9, 0.0  ;;  %v574_v35 = vmul.f32 1.442695, %v566_v6 }
 0x44a   :  { %606 = vadd.xlane.f32.xlu0 %v605_v12 }
 0x44b   :  { %v889_v14 = vpop.xlane.xlu1 %888  ;;  %1900 = vpow2.f32 %v574_v35 }
 0x44c   :  { %v2237_v15 = vpop.eup %1888  ;;  %v895_v5 = vmul.f32 0.015625, %v889_v14 }
 0x44d   :  { %v602_v27 = vsel %vm58_vm0, %v2237_v15, 0.0  ;;  %v1891_v28 = vpop.eup %1890 }
 0x44e   :  { %v2243_v1 = vsub.f32 %v2226_v34, %v895_v5  ;;  %603 = vadd.xlane.f32.xlu0 %v602_v27  ;;  %v611_v37 = vsel %vm58_vm0, %v1891_v28, 0.0  ;;  %v1893_v38 = vpop.eup %1892 }
 0x44f   :  { %v608_v3 = vsel %vm58_vm0, %v1893_v38, 0.0 }
 0x450   :  { %v903_v33 = vmul.f32 %v2243_v1, %v2243_v1  ;;  %v2250_v41 = vpop.eup %1894 }
 0x451   :  { %v599_v42 = vsel %vm58_vm0, %v2250_v41, 0.0 }
 0x452   :  { %612 = vadd.xlane.f32.xlu0 %v611_v37  ;;  %v911_v40 = vsel %vm58_vm0, %v903_v33, 0.0 }
 0x453   :  { %912 = vadd.xlane.f32.xlu1 %v911_v40 }
 0x454   :  { %v2254_v43 = vpop.eup %1896 }
 0x455   :  { %v596_v44 = vsel %vm58_vm0, %v2254_v43, 0.0  ;;  %v2258_v47 = vpop.eup %1898 }
 0x456   :  { %609 = vadd.xlane.f32.xlu0 %v608_v3  ;;  %v593_v49 = vsel %vm58_vm0, %v2258_v47, 0.0 }
 0x458   :  { %v2262_v52 = vpop.eup %1900 }
 0x459   :  { %v590_v53 = vsel %vm58_vm0, %v2262_v52, 0.0 }
 0x45a   :  { %600 = vadd.xlane.f32.xlu0 %v599_v42 }
 0x45e   :  { %597 = vadd.xlane.f32.xlu0 %v596_v44 }
 0x462   :  { %594 = vadd.xlane.f32.xlu0 %v593_v49 }
 0x466   :  { %591 = vadd.xlane.f32.xlu0 %v590_v53 }
 0x47c   :  { %201 = vperm.xlu0 %1876, %v30_v54  }
 0x480   :  { %211 = vperm.xlu0 %1876, %v32_v58  }
 0x484   :  { %216 = vperm.xlu0 %1876, %v33_v60  }
 0x4a3   :  { %891 = vadd.xlane.f32.xlu0 %v890_v63 }
 0x4a7   :  { %885 = vadd.xlane.f32.xlu0 %v884_v2 }
 0x4ab   :  { %882 = vadd.xlane.f32.xlu0 %v881_v10 }
 0x4d3   :  { %v607_v12 = vpop.xlane.xlu0 %606 }
 0x4d7   :  { %v604_v13 = vpop.xlane.xlu0 %603 }
 0x4db   :  { %v613_v14 = vpop.xlane.xlu0 %612 }
 0x4dc   :  { %1902 = vrcp.f32 %v613_v14 }
 0x4dd   :  { %1904 = vrcp.f32 %v607_v12 }
 0x4df   :  { %v610_v5 = vpop.xlane.xlu0 %609 }
 0x4e0   :  { %1906 = vrcp.f32 %v610_v5 }
 0x4e1   :  { %1908 = vrcp.f32 %v604_v13 }
 0x4e3   :  { %v601_v17 = vpop.xlane.xlu0 %600 }
 0x4e4   :  { %1910 = vrcp.f32 %v601_v17 }
 0x4e7   :  { %v598_v6 = vpop.xlane.xlu0 %597 }
 0x4e8   :  { %1912 = vrcp.f32 %v598_v6 }
 0x4e9   :  { %v1903_v27 = vpop.eup %1902 }
 0x4ea   :  { %v629_v33 = vmul.f32 %v1903_v27, %v1891_v28  ;;  %v1905_v37 = vpop.eup %1904  ;;  %v1732_v28 = vpop.f32.mrf.mxu0 }
 0x4eb   :  { %v595_v35 = vpop.xlane.xlu0 %594  ;;  %v627_v42 = vmul.f32 %v1905_v37, %v2232_v9  ;;  %v368_v5 = vadd.f32 %v1732_v28, %v2230_v7 }
 0x4ec   :  { %1756 = vmatprep.subr.msk.mxu0 %vm58_vm0, %v629_v33  ;;  %1914 = vrcp.f32 %v595_v35  ;;  %v362_v58 = vpop.f32.mrf.mxu0 }
 0x4ed   :  { %v1907_v40 = vpop.eup %1906  ;;  %1757 = vmatpush3.xpose.msk.msra.mxu0 %vm58_vm0, %v629_v33 }
 0x4ee   :  { %v628_v3 = vmul.f32 %v1907_v40, %v1893_v38  ;;  %v1909_v44 = vpop.eup %1908 }
 0x4ef   :  { %v592_v49 = vpop.xlane.xlu0 %591  ;;  %v626_v53 = vmul.f32 %v1909_v44, %v2237_v15 }
 0x4f0   :  { %1758 = vmatprep.subr.msk.mxu0 %vm58_vm0, %v628_v3  ;;  %1916 = vrcp.f32 %v592_v49 }
 0x4f1   :  { %1759 = vmatpush3.xpose.msk.msra.mxu0 %vm58_vm0, %v628_v3  ;;  %v1911_v54 = vpop.eup %1910 }
 0x4f2   :  { %1760 = vmatprep.subr.msk.mxu0 %vm58_vm0, %v627_v42  ;;  %v625_v60 = vmul.f32 %v1911_v54, %v2250_v41  ;;  %v1735_v41 = vpop.f32.mrf.mxu0 }
 0x4f5   :  { %1761 = vmatpush3.xpose.msk.msra.mxu0 %vm58_vm0, %v627_v42  ;;  %v1913_v63 = vpop.eup %1912 }
 0x4f6   :  { %1762 = vmatprep.subr.msk.mxu0 %vm58_vm0, %v626_v53  ;;  %v624_v15 = vmul.f32 %v1913_v63, %v2254_v43  ;;  %v372_v43 = vpop.f32.mrf.mxu0  ;;  %v913_v63 = vpop.xlane.xlu1 %912 }
 0x4f7   :  { %v2305_v38 = vpop.permute.xlu0 %201 }
 0x4f8   :  { %v363_v9 = vadd.f32 %v362_v58, %v2305_v38 }
 0x4f9   :  { %1763 = vmatpush3.xpose.msk.msra.mxu0 %vm58_vm0, %v626_v53  ;;  %v1915_v2 = vpop.eup %1914 }
 0x4fa   :  { %1764 = vmatprep.subr.msk.mxu0 %vm58_vm0, %v625_v60  ;;  %1772 = vmatprep.mubr.msk.f32.mxu0 %vm58_vm0, %v363_v9  ;;  %v623_v10 = vmul.f32 %v1915_v2, %v2258_v47 }
 0x4fb   :  { %v2319_v14 = vpop.permute.xlu0 %211 }
 0x4fc   :  { %v373_v47 = vadd.f32 %v372_v43, %v2319_v14 }
 0x4fd   :  { %1765 = vmatpush3.xpose.msk.msra.mxu0 %vm58_vm0, %v625_v60  ;;  %v1917_v12 = vpop.eup %1916  ;;  %v2341_v60 = vld [vmem:[%s2552_s2 + $0x60] sm:$0xff] }
 0x4fe   :  { %1766 = vmatprep.subr.msk.mxu0 %vm58_vm0, %v624_v15  ;;  %v622_v13 = vmul.f32 %v1917_v12, %v2262_v52  ;;  %1786 = vmatprep.mubr.msk.f32.mxu1 %vm219_vm1, %v2341_v60 }
 0x4ff   :  { %v2326_v17 = vpop.permute.xlu0 %216 }
 0x500   :  { %v378_v52 = vadd.f32 %v1735_v41, %v2326_v17 }
 0x501   :  { %1767 = vmatpush3.xpose.msk.msra.mxu0 %vm58_vm0, %v624_v15  ;;  %v919_v15 = vmul.f32 0.015625, %v913_v63 }
 0x502   :  { %1768 = vmatprep.subr.msk.mxu0 %vm58_vm0, %v623_v10 }
 0x503   :  { %v923_v2 = vadd.f32 1e-05, %v919_v15  ;;  %v2351_v15 = vld [vmem:[%s2552_s2 + $0x68] sm:$0xff] }
 0x505   :  { %1769 = vmatpush3.xpose.msk.msra.mxu0 %vm58_vm0, %v623_v10  ;;  %1918 = vrsqrt.f32 %v923_v2  ;;  %v2357_v2 = vld [vmem:[%s2552_s2 + $0x70] sm:$0xff] }
 0x506   :  { %1770 = vmatprep.subr.msk.mxu0 %vm58_vm0, %v622_v13 }
 0x509   :  { %1771 = vmatpush3.xpose.msk.msra.mxu0 %vm58_vm0, %v622_v13 }
 0x50c   :  { %1773 = vmatmul.mubr.msk.f32.vlgmr.msra.gmra.mxu0 %vm58_vm0, %v368_v5 }
 0x50d   :  { %1775 = vmatprep.mubr.msk.f32.mxu0 %vm58_vm0, %v373_v47 }
 0x510   :  { %1776 = vmatmul.mubr.msk.f32.gmra.mxu0 %vm58_vm0, %v378_v52 }
 0x52c   :  { %v892_v6 = vpop.xlane.xlu0 %891 }
 0x52d   :  { %v896_v27 = vmul.f32 0.015625, %v892_v6 }
 0x52f   :  { %v900_v33 = vsub.f32 %v2278_v62, %v896_v27 }
 0x530   :  { %v886_v35 = vpop.xlane.xlu0 %885 }
 0x531   :  { %v894_v37 = vmul.f32 0.015625, %v886_v35  ;;  %v904_v40 = vmul.f32 %v900_v33, %v900_v33  ;;  %v1919_v35 = vpop.eup %1918 }
 0x533   :  { %v898_v3 = vsub.f32 %v2285_v0, %v894_v37  ;;  %v914_v42 = vsel %vm58_vm0, %v904_v40, 0.0 }
 0x534   :  { %915 = vadd.xlane.f32.xlu0 %v914_v42  ;;  %v883_v44 = vpop.xlane.xlu0 %882 }
 0x535   :  { %v893_v49 = vmul.f32 0.015625, %v883_v44  ;;  %v902_v28 = vmul.f32 %v898_v3, %v898_v3 }
 0x537   :  { %v897_v53 = vsub.f32 %v2292_v11, %v893_v49  ;;  %v908_v54 = vsel %vm58_vm0, %v902_v28, 0.0  ;;  %v931_v49 = vmul.f32 %v1919_v35, %v2243_v1 }
 0x538   :  { %909 = vadd.xlane.f32.xlu0 %v908_v54 }
 0x539   :  { %v901_v58 = vmul.f32 %v897_v53, %v897_v53  ;;  %v935_v63 = vmul.f32 %v931_v49, %v2070_v55 }
 0x53b   :  { %v905_v9 = vsel %vm58_vm0, %v901_v58, 0.0  ;;  %v939_v55 = vadd.f32 %v935_v63, %v2079_v61 }
 0x53c   :  { %906 = vadd.xlane.f32.xlu1 %v905_v9 }
 0x5bd   :  { %v916_v10 = vpop.xlane.xlu0 %915 }
 0x5be   :  { %v920_v12 = vmul.f32 0.015625, %v916_v10 }
 0x5c0   :  { %v924_v41 = vadd.f32 1e-05, %v920_v12 }
 0x5c1   :  { %v910_v13 = vpop.xlane.xlu0 %909 }
 0x5c2   :  { %1920 = vrsqrt.f32 %v924_v41  ;;  %v918_v43 = vmul.f32 0.015625, %v910_v13 }
 0x5c4   :  { %v922_v5 = vadd.f32 1e-05, %v918_v43 }
 0x5c5   :  { %v907_v47 = vpop.xlane.xlu1 %906 }
 0x5c6   :  { %1922 = vrsqrt.f32 %v922_v5  ;;  %v917_v52 = vmul.f32 0.015625, %v907_v47 }
 0x5c8   :  { %v921_v6 = vadd.f32 1e-05, %v917_v52 }
 0x5ca   :  { %1924 = vrsqrt.f32 %v921_v6 }
 0x5cc   :  { %v1774_v27 = vpop.f32.mrf.mxu0 }
 0x5ce   :  { %v732_v37 = vpop.f32.mrf.mxu0 }
 0x5cf   :  { %v1921_v40 = vpop.eup %1920 }
 0x5d0   :  { %v1777_v42 = vpop.f32.mrf.mxu0  ;;  %v932_v44 = vmul.f32 %v1921_v40, %v900_v33 }
 0x5d1   :  { %1778 = vmatprep.subr.mxu1 %v1777_v42 }
 0x5d2   :  { %v742_v28 = vpop.f32.mrf.mxu0  ;;  %1779 = vmatpush3.msra.mxu1 %v1777_v42  ;;  %v936_v58 = vmul.f32 %v932_v44, %v2076_v59 }
 0x5d3   :  { %v1923_v54 = vpop.eup %1922  ;;  %1780 = vmatprep.subr.mxu1 %v742_v28 }
 0x5d4   :  { %1781 = vmatpush3.msra.mxu1 %v742_v28  ;;  %v930_v9 = vmul.f32 %v1923_v54, %v898_v3  ;;  %v940_v1 = vadd.f32 %v936_v58, %v2072_v56  ;;  %v2368_v56 = vld [vmem:[%s2552_s2 + $0x78] sm:$0xff] }
 0x5d5   :  { %1782 = vmatprep.subr.mxu1 %v1774_v27 }
 0x5d6   :  { %1783 = vmatpush3.msra.mxu1 %v1774_v27  ;;  %v934_v59 = vmul.f32 %v930_v9, %v2074_v57 }
 0x5d7   :  { %v1925_v33 = vpop.eup %1924  ;;  %1784 = vmatprep.subr.mxu1 %v732_v37 }
 0x5d8   :  { %1785 = vmatpush3.msra.mxu1 %v732_v37  ;;  %v929_v3 = vmul.f32 %v1925_v33, %v897_v53  ;;  %v938_v57 = vadd.f32 %v934_v59, %v2090_v8 }
 0x5d9   :  { %1787 = vmatmul.mubr.msk.f32.vlgmr.msra.gmra.mxu1 %vm219_vm1, %v2351_v15  ;;  %1792 = vmatprep.subr.mxu1 %v940_v1 }
 0x5da   :  { %1793 = vmatpush3.msra.mxu1 %v940_v1  ;;  %1789 = vmatprep.mubr.msk.f32.mxu1 %vm219_vm1, %v2357_v2  ;;  %v933_v10 = vmul.f32 %v929_v3, %v2085_v4 }
 0x5db   :  { %1794 = vmatprep.subr.mxu1 %v939_v55 }
 0x5dc   :  { %1795 = vmatpush3.msra.mxu1 %v939_v55  ;;  %v937_v53 = vadd.f32 %v933_v10, %v2094_v16 }
 0x5dd   :  { %1790 = vmatmul.mubr.msk.f32.gmra.mxu1 %vm219_vm1, %v2368_v56  ;;  %1796 = vmatprep.subr.mxu1 %v938_v57 }
 0x5de   :  { %1797 = vmatpush3.msra.mxu1 %v938_v57  ;;  %1800 = vmatprep.mubr.msk.f32.mxu1 %vm219_vm1, %v2066_v45 }
 0x5df   :  { %1798 = vmatprep.subr.mxu1 %v937_v53 }
 0x5e0   :  { %1799 = vmatpush3.msra.mxu1 %v937_v53 }
 0x5e1   :  { %1801 = vmatmul.mubr.msk.f32.vlgmr.msra.gmra.mxu1 %vm219_vm1, %v2100_v18 }
 0x5e2   :  { %1803 = vmatprep.mubr.msk.f32.mxu1 %vm219_vm1, %v2105_v19 }
 0x5e5   :  { %1804 = vmatmul.mubr.msk.f32.gmra.mxu1 %vm219_vm1, %v2114_v20 }
 0x5e6   :  { %1806 = vmatprep.mubr.msk.f32.mxu1 %vm219_vm1, %v2119_v21 }
 0x5e9   :  { %1807 = vmatmul.mubr.msk.f32.gmra.mxu1 %vm219_vm1, %v2128_v22 }
 0x5ea   :  { %1809 = vmatprep.mubr.msk.f32.mxu1 %vm219_vm1, %v2133_v23 }
 0x5ed   :  { %1810 = vmatmul.mubr.msk.f32.gmra.mxu1 %vm219_vm1, %v2142_v24 }
 0x5ee   :  { %1812 = vmatprep.mubr.msk.f32.mxu1 %vm219_vm1, %v2173_v50 }
 0x5f1   :  { %1813 = vmatmul.mubr.msk.f32.gmra.mxu1 %vm219_vm1, %v2178_v51 }
 0x5f2   :  { %1815 = vmatprep.mubr.msk.f32.mxu1 %vm219_vm1, %v2210_v29 }
 0x5f5   :  { %1816 = vmatmul.mubr.msk.f32.gmra.mxu1 %vm219_vm1, %v2217_v31 }
 0x699   :  { %v2399_v45 = vpop.f32.mrf.mxu1 }
 0x69b   :  { %v2401_v61 = vpop.f32.mrf.mxu1 }
 0x69d   :  { %v2403_v4 = vpop.f32.mrf.mxu1 }
 0x69f   :  { %v2405_v8 = vpop.f32.mrf.mxu1 }
 0x6a1   :  { %v1802_v16 = vpop.f32.mrf.mxu1 }
 0x6a2   :  { %v1013_v22 = vadd.f32 %v1802_v16, %v2148_v26 }
 0x6a3   :  { %v1007_v18 = vpop.f32.mrf.mxu1 }
 0x6a4   :  { %v1008_v19 = vadd.f32 %v1007_v18, %v2146_v25 }
 0x6a5   :  { %v1805_v20 = vpop.f32.mrf.mxu1 }
 0x6a6   :  { %1066 = vxpose.xlu0.b32.start [1/4] (short) (narrow) %v1008_v19, 64  ;;  %v1023_v12 = vadd.f32 %v1805_v20, %v2153_v32 }
 0x6a7   :  { %v1017_v21 = vpop.f32.mrf.mxu1 }
 0x6a8   :  { %v1018_v50 = vadd.f32 %v1017_v21, %v2151_v30 }
 0x6a9   :  { %v1808_v23 = vpop.f32.mrf.mxu1 }
 0x6aa   :  { %1067 = vxpose.xlu0.b32.cont [2/4] (short) (narrow) %v1013_v22, 64  ;;  %v1033_v26 = vadd.f32 %v1808_v23, %v2164_v46 }
 0x6ab   :  { %v1027_v24 = vpop.f32.mrf.mxu1 }
 0x6ac   :  { %v1028_v30 = vadd.f32 %v1027_v24, %v2167_v48 }
 0x6ad   :  { %v1811_v51 = vpop.f32.mrf.mxu1 }
 0x6ae   :  { %v1043_v29 = vadd.f32 %v1811_v51, %v2156_v36  ;;  %1068 = vxpose.xlu0.b32.cont [3/4] (short) (narrow) %v1018_v50, 64 }
 0x6af   :  { %v1037_v31 = vpop.f32.mrf.mxu1 }
 0x6b0   :  { %v1038_v41 = vadd.f32 %v1037_v31, %v2159_v39  ;;  %1818 = vmatprep.subr.mxu0 %v1043_v29 }
 0x6b1   :  { %v2413_v25 = vpop.f32.mrf.mxu1  ;;  %1819 = vmatpush3.msra.mxu0 %v1043_v29 }
 0x6b2   :  { %1820 = vmatprep.subr.mxu0 %v1038_v41  ;;  %1069 = vxpose.xlu0.b32.end [4/4] (short) (narrow) %v1023_v12, 64 }
 0x6b3   :  { %v1047_v13 = vpop.f32.mrf.mxu1  ;;  %1821 = vmatpush3.msra.mxu0 %v1038_v41 }
 0x6b4   :  { %v1048_v36 = vadd.f32 %v1047_v13, %v2305_v38  ;;  %1822 = vmatprep.subr.mxu0 %v1033_v26 }
 0x6b5   :  { %1823 = vmatpush3.msra.mxu0 %v1033_v26 }
 0x6b6   :  { %1824 = vmatprep.subr.mxu0 %v1028_v30  ;;  %1854 = vmatprep.mubr.msk.f32.mxu1 %vm58_vm0, %v1048_v36 }
 0x6b7   :  { %1825 = vmatpush3.msra.mxu0 %v1028_v30 }
 0x722   :  { %v1082_v32 = vpop.trf.xlu0 }
 0x723   :  { %1826 = vmatprep.mubr.msk.f32.mxu0 %vm219_vm1, %v1082_v32 }
 0x726   :  { %v1083_v39 = vpop.trf.xlu0 }
 0x727   :  { %1827 = vmatmul.mubr.msk.f32.vlgmr.msra.gmra.mxu0 %vm219_vm1, %v1083_v39 }
 0x72a   :  { %v1084_v46 = vpop.trf.xlu0 }
 0x72b   :  { %1829 = vmatprep.mubr.msk.f32.mxu0 %vm219_vm1, %v1084_v46 }
 0x72e   :  { %v1085_v43 = vpop.trf.xlu0 }
 0x72f   :  { %1830 = vmatmul.mubr.msk.f32.gmra.mxu0 %vm219_vm1, %v1085_v43 }
 0x732   :  { %v1086_v48 = vpop.trf.xlu0 }
 0x733   :  { %1832 = vmatprep.mubr.msk.f32.mxu0 %vm219_vm1, %v1086_v48 }
 0x736   :  { %v1087_v38 = vpop.trf.xlu0 }
 0x737   :  { %1833 = vmatmul.mubr.msk.f32.gmra.mxu0 %vm219_vm1, %v1087_v38 }
 0x73a   :  { %v1088_v5 = vpop.trf.xlu0 }
 0x73b   :  { %1835 = vmatprep.mubr.msk.f32.mxu0 %vm219_vm1, %v1088_v5 }
 0x73e   :  { %v1089_v47 = vpop.trf.xlu0 }
 0x73f   :  { %1836 = vmatmul.mubr.msk.f32.gmra.mxu0 %vm219_vm1, %v1089_v47 }
 0x740   :  { %1868 = vmatprep.mubr.msk.f32.mxu0 %vm219_vm1, %v2341_v60 }
 0x7e7   :  { %v1828_v52 = vpop.f32.mrf.mxu0 }
 0x7e8   :  { %v1230_v63 = vsel %vm58_vm0, %v1828_v52, -inf }
 0x7e9   :  { %v2429_v6 = vpop.f32.mrf.mxu0 }
 0x7ea   :  { %v1227_v33 = vsel %vm58_vm0, %v2429_v6, -inf }
 0x7ef   :  { %v1831_v27 = vpop.f32.mrf.mxu0 }
 0x7f0   :  { %v1236_v58 = vsel %vm58_vm0, %v1831_v27, -inf }
 0x7f1   :  { %v1198_v35 = vpop.f32.mrf.mxu0 }
 0x7f2   :  { %v1233_v9 = vsel %vm58_vm0, %v1198_v35, -inf }
 0x7f7   :  { %v1834_v37 = vpop.f32.mrf.mxu0 }
 0x7f8   :  { %v1242_v54 = vsel %vm58_vm0, %v1834_v37, -inf }
 0x7f9   :  { %v1208_v40 = vpop.f32.mrf.mxu0 }
 0x7fa   :  { %v1239_v60 = vsel %vm58_vm0, %v1208_v40, -inf }
 0x7ff   :  { %v1837_v42 = vpop.f32.mrf.mxu0 }
 0x800   :  { %v1248_v44 = vsel %vm58_vm0, %v1837_v42, -inf }
 0x801   :  { %1249 = vmax.xlane.f32.xlu1 %v1248_v44  ;;  %v1218_v49 = vpop.f32.mrf.mxu0  ;;  %v34_v44 = vld [vmem:[%s2551_s1 + $0xa0] sm:$0xff] }
 0x802   :  { %v1245_v28 = vsel %vm58_vm0, %v1218_v49, -inf }
 0x805   :  { %1246 = vmax.xlane.f32.xlu1 %v1245_v28  ;;  %v36_v28 = vld [vmem:[%s2551_s1 + $0xb0] sm:$0xff] }
 0x809   :  { %1243 = vmax.xlane.f32.xlu1 %v1242_v54  ;;  %v37_v54 = vld [vmem:[%s2551_s1 + $0xb8] sm:$0xff] }
 0x80d   :  { %1240 = vmax.xlane.f32.xlu1 %v1239_v60 }
 0x811   :  { %1237 = vmax.xlane.f32.xlu1 %v1236_v58 }
 0x815   :  { %1234 = vmax.xlane.f32.xlu1 %v1233_v9 }
 0x819   :  { %1231 = vmax.xlane.f32.xlu1 %v1230_v63 }
 0x81d   :  { %1228 = vmax.xlane.f32.xlu1 %v1227_v33 }
 0x88a   :  { %v1250_v1 = vpop.xlane.xlu1 %1249 }
 0x88b   :  { %v1258_v59 = vsub.f32 %v1837_v42, %v1250_v1 }
 0x88d   :  { %v1273_v3 = vmul.f32 1.442695, %v1258_v59 }
 0x88e   :  { %v1247_v55 = vpop.xlane.xlu1 %1246 }
 0x88f   :  { %1926 = vpow2.f32 %v1273_v3  ;;  %v1257_v10 = vsub.f32 %v1218_v49, %v1247_v55  ;;  %v35_v49 = vld [vmem:[%s2551_s1 + $0xa8] sm:$0xff] }
 0x891   :  { %v1271_v57 = vmul.f32 1.442695, %v1257_v10 }
 0x892   :  { %v1244_v53 = vpop.xlane.xlu1 %1243 }
 0x893   :  { %1928 = vpow2.f32 %v1271_v57  ;;  %v1256_v16 = vsub.f32 %v1834_v37, %v1244_v53 }
 0x895   :  { %v1269_v18 = vmul.f32 1.442695, %v1256_v16 }
 0x896   :  { %v1241_v19 = vpop.xlane.xlu1 %1240 }
 0x897   :  { %1930 = vpow2.f32 %v1269_v18  ;;  %v1255_v20 = vsub.f32 %v1208_v40, %v1241_v19 }
 0x899   :  { %v1267_v21 = vmul.f32 1.442695, %v1255_v20 }
 0x89a   :  { %v1238_v22 = vpop.xlane.xlu1 %1237 }
 0x89b   :  { %1932 = vpow2.f32 %v1267_v21  ;;  %v1254_v23 = vsub.f32 %v1831_v27, %v1238_v22 }
 0x89c   :  { %v1927_v24 = vpop.eup %1926 }
 0x89d   :  { %v1265_v50 = vmul.f32 1.442695, %v1254_v23  ;;  %v1296_v51 = vsel %vm58_vm0, %v1927_v24, 0.0 }
 0x89e   :  { %1297 = vadd.xlane.f32.xlu1 %v1296_v51  ;;  %v1235_v29 = vpop.xlane.xlu1 %1234  ;;  %v1958_v51 = vld [vmem:[%s2550_s0] sm:$0xff] }
 0x89f   :  { %1934 = vpow2.f32 %v1265_v50  ;;  %v1253_v31 = vsub.f32 %v1198_v35, %v1235_v29 }
 0x8a0   :  { %v1929_v12 = vpop.eup %1928 }
 0x8a1   :  { %v1263_v41 = vmul.f32 1.442695, %v1253_v31  ;;  %v1293_v26 = vsel %vm58_vm0, %v1929_v12, 0.0 }
 0x8a2   :  { %1294 = vadd.xlane.f32.xlu1 %v1293_v26  ;;  %v1232_v13 = vpop.xlane.xlu1 %1231  ;;  %v1959_v26 = vld [vmem:[%s2550_s0 + $0x8] sm:$0xff] }
 0x8a3   :  { %1936 = vpow2.f32 %v1263_v41  ;;  %v1252_v30 = vsub.f32 %v1828_v52, %v1232_v13 }
 0x8a4   :  { %v1931_v36 = vpop.eup %1930 }
 0x8a5   :  { %v1261_v32 = vmul.f32 1.442695, %v1252_v30  ;;  %v1290_v39 = vsel %vm58_vm0, %v1931_v36, 0.0 }
 0x8a6   :  { %1291 = vadd.xlane.f32.xlu1 %v1290_v39  ;;  %v1229_v46 = vpop.xlane.xlu1 %1228 }
 0x8a7   :  { %1938 = vpow2.f32 %v1261_v32  ;;  %v1251_v43 = vsub.f32 %v2429_v6, %v1229_v46  ;;  %v1817_v32 = vpop.f32.mrf.mxu1  ;;  %v1960_v46 = vld [vmem:[%s2550_s0 + $0x10] sm:$0xff] }
 0x8a8   :  { %v1933_v48 = vpop.eup %1932 }
 0x8a9   :  { %v1259_v38 = vmul.f32 1.442695, %v1251_v43  ;;  %v1287_v5 = vsel %vm58_vm0, %v1933_v48, 0.0 }
 0x8aa   :  { %1288 = vadd.xlane.f32.xlu1 %v1287_v5  ;;  %v1057_v5 = vpop.f32.mrf.mxu1 }
 0x8ab   :  { %1940 = vpow2.f32 %v1259_v38 }
 0x8ac   :  { %v1935_v47 = vpop.eup %1934 }
 0x8ad   :  { %v1284_v27 = vsel %vm58_vm0, %v1935_v47, 0.0 }
 0x8ae   :  { %1285 = vadd.xlane.f32.xlu1 %v1284_v27  ;;  %v1961_v27 = vld [vmem:[%s2550_s0 + $0x18] sm:$0xff] }
 0x8b0   :  { %v1937_v52 = vpop.eup %1936 }
 0x8b1   :  { %v1281_v35 = vsel %vm58_vm0, %v1937_v52, 0.0 }
 0x8b2   :  { %1282 = vadd.xlane.f32.xlu1 %v1281_v35  ;;  %v1058_v35 = vadd.f32 %v1057_v5, %v2319_v14 }
 0x8b4   :  { %v2447_v37 = vpop.eup %1938 }
 0x8b5   :  { %v1278_v40 = vsel %vm58_vm0, %v2447_v37, 0.0 }
 0x8b6   :  { %1279 = vadd.xlane.f32.xlu0 %v1278_v40 }
 0x8b8   :  { %v2451_v6 = vpop.eup %1940 }
 0x8b9   :  { %v1275_v42 = vsel %vm58_vm0, %v2451_v6, 0.0 }
 0x8ba   :  { %1276 = vadd.xlane.f32.xlu1 %v1275_v42 }
 0x8cb   :  { %753 = vperm.xlu1 %1877, %v34_v44  }
 0x8cf   :  { %758 = vperm.xlu1 %1877, %v35_v49  }
 0x8d3   :  { %763 = vperm.xlu1 %1877, %v36_v28  }
 0x8d7   :  { %768 = vperm.xlu1 %1877, %v37_v54  }
 0x927   :  { %v1298_v60 = vpop.xlane.xlu1 %1297 }
 0x928   :  { %1942 = vrcp.f32 %v1298_v60 }
 0x92b   :  { %v1295_v58 = vpop.xlane.xlu1 %1294 }
 0x92c   :  { %1944 = vrcp.f32 %v1295_v58 }
 0x92f   :  { %v1292_v9 = vpop.xlane.xlu1 %1291 }
 0x930   :  { %1946 = vrcp.f32 %v1292_v9 }
 0x933   :  { %v1289_v63 = vpop.xlane.xlu1 %1288 }
 0x934   :  { %1948 = vrcp.f32 %v1289_v63 }
 0x935   :  { %v1943_v33 = vpop.eup %1942 }
 0x936   :  { %v1314_v1 = vmul.f32 %v1943_v33, %v1927_v24 }
 0x937   :  { %v1286_v59 = vpop.xlane.xlu1 %1285 }
 0x938   :  { %1950 = vrcp.f32 %v1286_v59  ;;  %1838 = vmatprep.subr.msk.mxu1 %vm58_vm0, %v1314_v1 }
 0x939   :  { %v1945_v3 = vpop.eup %1944  ;;  %1839 = vmatpush3.xpose.msk.msra.mxu1 %vm58_vm0, %v1314_v1 }
 0x93a   :  { %v1313_v55 = vmul.f32 %v1945_v3, %v1929_v12 }
 0x93b   :  { %v1283_v10 = vpop.xlane.xlu1 %1282 }
 0x93c   :  { %1952 = vrcp.f32 %v1283_v10  ;;  %1840 = vmatprep.subr.msk.mxu1 %vm58_vm0, %v1313_v55 }
 0x93d   :  { %v1947_v57 = vpop.eup %1946  ;;  %1841 = vmatpush3.xpose.msk.msra.mxu1 %vm58_vm0, %v1313_v55 }
 0x93e   :  { %v1312_v53 = vmul.f32 %v1947_v57, %v1931_v36 }
 0x93f   :  { %v1280_v16 = vpop.xlane.xlu0 %1279 }
 0x940   :  { %1954 = vrcp.f32 %v1280_v16  ;;  %1842 = vmatprep.subr.msk.mxu1 %vm58_vm0, %v1312_v53 }
 0x941   :  { %v1949_v18 = vpop.eup %1948  ;;  %1843 = vmatpush3.xpose.msk.msra.mxu1 %vm58_vm0, %v1312_v53 }
 0x942   :  { %v1311_v19 = vmul.f32 %v1949_v18, %v1933_v48 }
 0x943   :  { %v1277_v20 = vpop.xlane.xlu1 %1276 }
 0x944   :  { %1956 = vrcp.f32 %v1277_v20  ;;  %1844 = vmatprep.subr.msk.mxu1 %vm58_vm0, %v1311_v19 }
 0x945   :  { %v1951_v21 = vpop.eup %1950  ;;  %1845 = vmatpush3.xpose.msk.msra.mxu1 %vm58_vm0, %v1311_v19 }
 0x946   :  { %v1310_v22 = vmul.f32 %v1951_v21, %v1935_v47  ;;  %v1053_v47 = vadd.f32 %v2413_v25, %v2230_v7 }
 0x947   :  { %v754_v23 = vpop.permute.xlu1 %753 }
 0x948   :  { %v850_v24 = vadd.f32 %v2401_v61, %v754_v23  ;;  %1846 = vmatprep.subr.msk.mxu1 %vm58_vm0, %v1310_v22 }
 0x949   :  { %v1953_v50 = vpop.eup %1952  ;;  %1847 = vmatpush3.xpose.msk.msra.mxu1 %vm58_vm0, %v1310_v22 }
 0x94a   :  { %v868_v29 = vadd.f32 %v1958_v51, %v850_v24  ;;  %v1309_v31 = vmul.f32 %v1953_v50, %v1937_v52 }
 0x94b   :  { %v759_v12 = vpop.permute.xlu1 %758 }
 0x94c   :  { %872 = vst.msk [vmem:[%s2553_s3] sm:$0xff] %vm58_vm0, %v868_v29  ;;  %v855_v41 = vadd.f32 %v2399_v45, %v759_v12  ;;  %1848 = vmatprep.subr.msk.mxu1 %vm58_vm0, %v1309_v31 }
 0x94d   :  { %v1955_v61 = vpop.eup %1954  ;;  %1849 = vmatpush3.xpose.msk.msra.mxu1 %vm58_vm0, %v1309_v31 }
 0x94e   :  { %v869_v13 = vadd.f32 %v1959_v26, %v855_v41  ;;  %v1308_v30 = vmul.f32 %v1955_v61, %v2447_v37 }
 0x94f   :  { %v764_v36 = vpop.permute.xlu1 %763 }
 0x950   :  { %873 = vst.msk [vmem:[%s2553_s3 + $0x8] sm:$0xff] %vm58_vm0, %v869_v13  ;;  %v860_v45 = vadd.f32 %v2405_v8, %v764_v36  ;;  %1850 = vmatprep.subr.msk.mxu1 %vm58_vm0, %v1308_v30 }
 0x951   :  { %v1957_v39 = vpop.eup %1956  ;;  %1851 = vmatpush3.xpose.msk.msra.mxu1 %vm58_vm0, %v1308_v30 }
 0x952   :  { %v870_v43 = vadd.f32 %v1960_v46, %v860_v45  ;;  %v1307_v48 = vmul.f32 %v1957_v39, %v2451_v6 }
 0x953   :  { %v769_v38 = vpop.permute.xlu1 %768 }
 0x954   :  { %874 = vst.msk [vmem:[%s2553_s3 + $0x10] sm:$0xff] %vm58_vm0, %v870_v43  ;;  %v865_v8 = vadd.f32 %v2403_v4, %v769_v38  ;;  %1852 = vmatprep.subr.msk.mxu1 %vm58_vm0, %v1307_v48  ;;  %v1063_v4 = vadd.f32 %v1817_v32, %v2326_v17 }
 0x955   :  { %1853 = vmatpush3.xpose.msk.msra.mxu1 %vm58_vm0, %v1307_v48 }
 0x956   :  { %v871_v52 = vadd.f32 %v1961_v27, %v865_v8 }
 0x958   :  { %875 = vst.msk [vmem:[%s2553_s3 + $0x18] sm:$0xff] %vm58_vm0, %v871_v52  ;;  %1855 = vmatmul.mubr.msk.f32.vlgmr.msra.gmra.mxu1 %vm58_vm0, %v1053_v47 }
 0x959   :  { %1857 = vmatprep.mubr.msk.f32.mxu1 %vm58_vm0, %v1058_v35 }
 0x95c   :  { %1858 = vmatmul.mubr.msk.f32.gmra.mxu1 %vm58_vm0, %v1063_v4 }
 0xa18   :  { %v1856_v7 = vpop.f32.mrf.mxu1 }
 0xa1a   :  { %v1417_v25 = vpop.f32.mrf.mxu1 }
 0xa1c   :  { %v1859_v37 = vpop.f32.mrf.mxu1 }
 0xa1d   :  { %1860 = vmatprep.subr.mxu0 %v1859_v37 }
 0xa1e   :  { %v1427_v40 = vpop.f32.mrf.mxu1  ;;  %1861 = vmatpush3.msra.mxu0 %v1859_v37 }
 0xa1f   :  { %1862 = vmatprep.subr.mxu0 %v1427_v40 }
 0xa20   :  { %1863 = vmatpush3.msra.mxu0 %v1427_v40 }
 0xa21   :  { %1864 = vmatprep.subr.mxu0 %v1856_v7 }
 0xa22   :  { %1865 = vmatpush3.msra.mxu0 %v1856_v7 }
 0xa23   :  { %1866 = vmatprep.subr.mxu0 %v1417_v25 }
 0xa24   :  { %1867 = vmatpush3.msra.mxu0 %v1417_v25 }
 0xa25   :  { %1869 = vmatmul.mubr.msk.f32.vlgmr.msra.gmra.mxu0 %vm219_vm1, %v2351_v15 }
 0xa26   :  { %1871 = vmatprep.mubr.msk.f32.mxu0 %vm219_vm1, %v2357_v2 }
 0xa29   :  { %1872 = vmatmul.mubr.msk.f32.gmra.mxu0 %vm219_vm1, %v2368_v56 }
 0xae5   :  { %v1870_v14 = vpop.f32.mrf.mxu0 }
 0xae6   :  { %v1508_v17 = vadd.f32 %v1870_v14, %v759_v12 }
 0xae7   :  { %v1502_v6 = vpop.f32.mrf.mxu0 }
 0xae8   :  { %v1522_v42 = vadd.f32 %v2285_v0, %v1508_v17  ;;  %v1503_v44 = vadd.f32 %v1502_v6, %v754_v23 }
 0xae9   :  { %v1873_v49 = vpop.f32.mrf.mxu0 }
 0xaea   :  { %1611 = vst.msk [vmem:[%s2553_s3 + $0x28] sm:$0xff] %vm58_vm0, %v1522_v42  ;;  %v1521_v15 = vadd.f32 %v2292_v11, %v1503_v44  ;;  %v1518_v28 = vadd.f32 %v1873_v49, %v769_v38 }
 0xaeb   :  { %v1512_v54 = vpop.f32.mrf.mxu0 }
 0xaec   :  { %1610 = vst.msk [vmem:[%s2553_s3 + $0x20] sm:$0xff] %vm58_vm0, %v1521_v15  ;;  %v1524_v2 = vadd.f32 %v2278_v62, %v1518_v28  ;;  %v1513_v56 = vadd.f32 %v1512_v54, %v764_v36 }
 0xaee   :  { %1613 = vst.msk [vmem:[%s2553_s3 + $0x38] sm:$0xff] %vm58_vm0, %v1524_v2  ;;  %v1523_v0 = vadd.f32 %v2226_v34, %v1513_v56 }
 0xaf0   :  { %1612 = vst.msk [vmem:[%s2553_s3 + $0x30] sm:$0xff] %vm58_vm0, %v1523_v0 }

</bundles_post_ra>
